<compile_context>
chip_gen: v7x
topology: tpu7x:2x2x1
jax: 0.10.0
libtpu: 0.0.40
codegen_flags: <defaults>
</compile_context>

<pallas_src>
import functools

import jax
import jax.numpy as jnp
from jax.experimental import pallas as pl
from jax.experimental.pallas import tpu as pltpu


def _l0_gate_kernel(x_ref, u_ref, loc_ref, o_ref, *, temp, gamma, zeta):
    """mask = hard_sigmoid(sigmoid((log(u/(1-u)) + loc)/temp) * (zeta-gamma) + gamma)
       out  = x * mask   (mask broadcast over the batch-tile axis)"""
    u = u_ref[...]                                     # (1, N) f32, u in (0, 1)
    loc = loc_ref[...]                                 # (1, N) f32
    s = jax.nn.sigmoid((jnp.log(u / (1.0 - u)) + loc) / temp)
    s = s * (zeta - gamma) + gamma
    mask = jnp.minimum(jnp.maximum(s, 0.0), 1.0)       # hard_sigmoid
    o_ref[...] = (x_ref[...] * mask).astype(o_ref.dtype)


# Conservative buffer budget for the 4 pipeline buffers (2x in + 2x out):
# fits v7x's 64 MiB VMEM/TC with headroom; v5e/v6e (128 MiB) trivially OK.
_PIPELINE_BUDGET_BYTES = 40 * 1024 * 1024
_MAX_TILE_B = 1024  # diminishing returns beyond ~512-1024 rows/tile


def l0_gate_layer_1d(x, u, loc, *, beta=2.0 / 3.0, gamma=-0.1, zeta=1.1):
    """Pallas implementation of L0GateLayer1d.forward (mask=None path).

    x:   (B, N)  activations (f32 or bf16)
    u:   (N,) or (1, N)  uniform(0,1) samples (the stochastic part of the mask)
    loc: (N,) or (1, N)  learned location parameter
    """
    B, N = x.shape
    u = jnp.asarray(u, jnp.float32).reshape(1, N)
    loc = jnp.asarray(loc, jnp.float32).reshape(1, N)

    # --- lane-dense feature dim: pad N up to a multiple of 128 ---------------
    n_pad = ((N + 127) // 128) * 128
    if n_pad != N:
        x_p = jnp.pad(x, ((0, 0), (0, n_pad - N)))
        # pad u with 0.5 (keeps log(u/(1-u)) finite on the padded tail)
        u_p = jnp.pad(u, ((0, 0), (0, n_pad - N)), constant_values=0.5)
        loc_p = jnp.pad(loc, ((0, 0), (0, n_pad - N)))
    else:
        x_p, u_p, loc_p = x, u, loc

    # --- batch tile size from the VMEM budget --------------------------------
    dtype_bytes = x.dtype.itemsize
    tile_b = _PIPELINE_BUDGET_BYTES // (4 * n_pad * dtype_bytes)
    tile_b = max(8, min(_MAX_TILE_B, (tile_b // 8) * 8))

    if B <= tile_b:
        tile_b = B            # block equals full batch dim -> no (8,) constraint
        b_pad = B
    else:
        b_pad = ((B + tile_b - 1) // tile_b) * tile_b
        if b_pad != B:
            x_p = jnp.pad(x_p, ((0, b_pad - B), (0, 0)))
    grid = (b_pad // tile_b,)

    # explicit scoped-VMEM limit: 4 pipeline buffers + u/loc + margin
    vmem_need = 4 * tile_b * n_pad * dtype_bytes + 8 * n_pad * 4 + (1 << 20)
    vmem_limit = int(min(max(vmem_need, 16 * 1024 * 1024), 48 * 1024 * 1024))

    kernel = functools.partial(_l0_gate_kernel, temp=beta, gamma=gamma, zeta=zeta)

    out = pl.pallas_call(
        kernel,
        out_shape=jax.ShapeDtypeStruct((b_pad, n_pad), x.dtype),
        grid=grid,
        in_specs=[
            pl.BlockSpec((tile_b, n_pad), lambda i: (i, 0)),   # x: tiled over batch
            pl.BlockSpec((1, n_pad), lambda i: (0, 0)),        # u: resident
            pl.BlockSpec((1, n_pad), lambda i: (0, 0)),        # loc: resident
        ],
        out_specs=pl.BlockSpec((tile_b, n_pad), lambda i: (i, 0)),
        compiler_params=pltpu.CompilerParams(
            dimension_semantics=("parallel",),   # batch tiles are independent
            vmem_limit_bytes=vmem_limit,
        ),
    )(x_p, u_p, loc_p)

    return out[:B, :N]


def reference_l0_gate(x, u, loc, *, beta=2.0 / 3.0, gamma=-0.1, zeta=1.1):
    u = jnp.asarray(u, jnp.float32).reshape(1, -1)
    loc = jnp.asarray(loc, jnp.float32).reshape(1, -1)
    s = jax.nn.sigmoid((jnp.log(u) - jnp.log(1.0 - u) + loc) / beta)
    s = s * (zeta - gamma) + gamma
    mask = jnp.clip(s, 0.0, 1.0)
    return (x * mask).astype(x.dtype)


if __name__ == "__main__":
    key = jax.random.PRNGKey(0)
    k_x, k_loc, k_u, k_x2 = jax.random.split(key, 4)

    batch = 2
    n_features = 32

    # Module __init__: loc ~ Normal(loc_mean=1, loc_sd=0.01), shape (n_features,)
    loc_mean, loc_sd = 1.0, 0.01
    loc = (loc_mean + loc_sd * jax.random.normal(k_loc, (n_features,))).astype(jnp.float32)

    # forward(): mask() samples uniform(0,1) noise of shape (n_features,)
    # (sampled here in JAX so the kernel stays deterministic given u)
    u = jax.random.uniform(
        k_u, (n_features,), dtype=jnp.float32, minval=1e-6, maxval=1.0 - 1e-6
    )

    # f32 check (module default path), ragged N=32 -> padded to 128 internally
    x = jax.random.normal(k_x, (batch, n_features), dtype=jnp.float32)
    out = jax.block_until_ready(l0_gate_layer_1d(x, u, loc))
    ref = reference_l0_gate(x, u, loc)
    assert out.shape == (batch, n_features)
    assert out.dtype == x.dtype
    assert jnp.allclose(out, ref, atol=1e-5, rtol=1e-5)

    # bf16 activations: mask math in f32, product cast back to bf16
    x_bf16 = jax.random.normal(k_x2, (16, 128), dtype=jnp.bfloat16)
    loc2 = (loc_mean + loc_sd * jax.random.normal(k_loc, (128,))).astype(jnp.float32)
    u2 = jax.random.uniform(k_u, (128,), dtype=jnp.float32, minval=1e-6, maxval=1.0 - 1e-6)
    out2 = jax.block_until_ready(l0_gate_layer_1d(x_bf16, u2, loc2))
    ref2 = reference_l0_gate(x_bf16, u2, loc2)
    assert out2.shape == x_bf16.shape
    assert out2.dtype == jnp.bfloat16
    assert jnp.allclose(out2.astype(jnp.float32), ref2.astype(jnp.float32),
                        atol=2e-2, rtol=2e-2)

    print("KERNEL_OK")
</pallas_src>

<mosaic_0001>
module attributes {stable_mosaic.version = 11 : i64} {
  func.func @_l0_gate_kernel(%arg0: i32, %arg1: memref<2x128xf32, #tpu.memory_space<vmem>>, %arg2: memref<1x128xf32, #tpu.memory_space<vmem>>, %arg3: memref<1x128xf32, #tpu.memory_space<vmem>>, %arg4: memref<2x128xf32, #tpu.memory_space<vmem>>) attributes {dimension_semantics = [#tpu.dimension_semantics<parallel>], iteration_bounds = array<i64: 1>, scalar_prefetch = 0 : i64, scratch_operands = 0 : i64, tpu.core_type = #tpu.core_type<tc>, window_params = [{transform_indices = @transform_0, window_bounds = array<i64: 2, 128>}, {pipeline_mode = #tpu.pipeline_mode<synchronous>, transform_indices = @transform_1, window_bounds = array<i64: 1, 128>}, {pipeline_mode = #tpu.pipeline_mode<synchronous>, transform_indices = @transform_2, window_bounds = array<i64: 1, 128>}, {transform_indices = @transform_3, window_bounds = array<i64: 2, 128>}]} {
    %c0 = arith.constant 0 : index
    %c0_0 = arith.constant 0 : index
    %0 = vector.load %arg2[%c0, %c0_0] : memref<1x128xf32, #tpu.memory_space<vmem>>, vector<1x128xf32>
    %c0_1 = arith.constant 0 : index
    %c0_2 = arith.constant 0 : index
    %1 = vector.load %arg3[%c0_1, %c0_2] : memref<1x128xf32, #tpu.memory_space<vmem>>, vector<1x128xf32>
    %cst = arith.constant 1.000000e+00 : f32
    %2 = vector.broadcast %cst : f32 to vector<1x128xf32>
    %3 = arith.subf %2, %0 : vector<1x128xf32>
    %4 = arith.divf %0, %3 : vector<1x128xf32>
    %5 = math.log %4 : vector<1x128xf32>
    %6 = arith.addf %5, %1 : vector<1x128xf32>
    %cst_3 = arith.constant 0.666666686 : f32
    %7 = vector.broadcast %cst_3 : f32 to vector<1x128xf32>
    %8 = arith.divf %6, %7 : vector<1x128xf32>
    %9 = arith.negf %8 : vector<1x128xf32>
    %10 = math.exp %9 : vector<1x128xf32>
    %cst_4 = arith.constant 1.000000e+00 : f32
    %11 = vector.broadcast %cst_4 : f32 to vector<1x128xf32>
    %12 = arith.addf %11, %10 : vector<1x128xf32>
    %13 = arith.divf %11, %12 : vector<1x128xf32>
    %cst_5 = arith.constant 1.200000e+00 : f32
    %14 = vector.broadcast %cst_5 : f32 to vector<1x128xf32>
    %15 = arith.mulf %13, %14 : vector<1x128xf32>
    %cst_6 = arith.constant -1.000000e-01 : f32
    %16 = vector.broadcast %cst_6 : f32 to vector<1x128xf32>
    %17 = arith.addf %15, %16 : vector<1x128xf32>
    %cst_7 = arith.constant 0.000000e+00 : f32
    %18 = vector.broadcast %cst_7 : f32 to vector<1x128xf32>
    %19 = arith.maximumf %17, %18 : vector<1x128xf32>
    %cst_8 = arith.constant 1.000000e+00 : f32
    %20 = vector.broadcast %cst_8 : f32 to vector<1x128xf32>
    %21 = arith.minimumf %19, %20 : vector<1x128xf32>
    %c0_9 = arith.constant 0 : index
    %c0_10 = arith.constant 0 : index
    %22 = vector.load %arg1[%c0_9, %c0_10] : memref<2x128xf32, #tpu.memory_space<vmem>>, vector<2x128xf32>
    %23 = vector.broadcast %21 : vector<1x128xf32> to vector<2x128xf32>
    %24 = arith.mulf %22, %23 : vector<2x128xf32>
    %c0_11 = arith.constant 0 : index
    %c0_12 = arith.constant 0 : index
    %25 = vector.load %arg4[%c0_11, %c0_12] : memref<2x128xf32, #tpu.memory_space<vmem>>, vector<2x128xf32>
    tpu.vector_store %arg4[%c0_11, %c0_12], %24 {strides = array<i32>} : memref<2x128xf32, #tpu.memory_space<vmem>>, vector<2x128xf32>,
    return
  }
  func.func @transform_0(%arg0: i32) -> (i32, i32) {
    %c0_i32 = arith.constant 0 : i32
    %c0_i32_0 = arith.constant 0 : i32
    return %arg0, %c0_i32 : i32, i32
  }
  func.func @transform_1(%arg0: i32) -> (i32, i32) {
    %c0_i32 = arith.constant 0 : i32
    %c0_i32_0 = arith.constant 0 : i32
    %c0_i32_1 = arith.constant 0 : i32
    return %c0_i32, %c0_i32_0 : i32, i32
  }
  func.func @transform_2(%arg0: i32) -> (i32, i32) {
    %c0_i32 = arith.constant 0 : i32
    %c0_i32_0 = arith.constant 0 : i32
    %c0_i32_1 = arith.constant 0 : i32
    return %c0_i32, %c0_i32_0 : i32, i32
  }
  func.func @transform_3(%arg0: i32) -> (i32, i32) {
    %c0_i32 = arith.constant 0 : i32
    %c0_i32_0 = arith.constant 0 : i32
    return %arg0, %c0_i32 : i32, i32
  }
}

</mosaic_0001>

<bundles_post_ra>
// kernel: tpu_custom_call.1
= control target key start
LH: loop header
LB: loop body
LE: loop exit
PB: predicated region body
PF: predicated region fallthrough
CT: control target
= control target key end

     0   :  { %8 = vsyncpa [#allocation3], 0  ;;  %s182_s0 = inlined_call_operand.hbm [shape: f32[2,128], index: 0, kind: input, shape index: {}]   ;;  %s183_s1 = inlined_call_operand.vmem [shape: f32[1,128], index: 1, kind: input, shape index: {}]   ;;  %s184_s2 = inlined_call_operand.vmem [shape: f32[1,128], index: 2, kind: input, shape index: {}]   ;;  %s185_s3 = inlined_call_operand.hbm [shape: f32[2,128], index: 3, kind: output, shape index: {}]  }
   0x1   :  { %9 = vsyncpa [#allocation4], 0  ;;  %s130_s12 = smov [#allocation2]   ;;  %s82_s16 = scalar_lea.hbm %s182_s0, 32 }
   0x2   :  { %s16_s13 = sshll.u32 %s130_s12, 4  ;;  %p83_p0 = scmp.ne.s32.totalorder %s182_s0, %s82_s16  ;;  %s17_s13 = int_to_ptr.vmem [resolvable:$true] %s16_s13 }
   0x3   :  { %p86_p1 = scmp.lt.u32.totalorder %s82_s16, %s182_s0 }
   0x5   :  { %p88_p2 = pnand %p86_p1, %p83_p0 }
   0x7   :  { %91 = shalt.err (!%p88_p2)
}
   0x8   :  { %s92_s21 = scalar_lea.vmem %s17_s13, 32  ;;  %p97_p4 = scmp.lt.s32.totalorder %s17_s13, %s17_s13 }
   0x9   :  { %p93_p3 = scmp.ne.s32.totalorder %s17_s13, %s92_s21  ;;  %p98_p5 = scmp.lt.s32.totalorder %s92_s21, %s92_s21 }
   0xb   :  { %p99_p6 = por %p98_p5, %p97_p4 }
   0xd   :  { %p100_p7 = pnand %p99_p6, %p93_p3 }
   0xf   :  { %103 = shalt.err (!%p100_p7)
}
  0x10   :  { %19 = dma.hbm_to_vmem [thread:$0]  %s182_s0, 32, %s17_s13, [#allocation3]  }
  0x11   :  { %126 = dma.done.wait [#allocation3], 32  }
  0x12   :  { %127 = vsyncadd [#allocation3], 4294967264  ;;  %v27_v0 = vld [vmem:[%s183_s1] sm:$0x1]  ;;  %v49_v12 = vlaneseq  ;;  %s131_s0 = smov [#allocation5]  }
  0x13   :  { %v29_v1 = vsub.f32 1.0, %v27_v0  ;;  %v28_v5 = vld [vmem:[%s184_s2] sm:$0x1]  ;;  %s62_s1 = sshll.u32 %s131_s0, 4  ;;  %s63_s1 = int_to_ptr.vmem [resolvable:$true] %s62_s1 }
  0x14   :  { %v50_v15 = vshrl.u32 %v49_v12, 7  ;;  %v47_v20 = vld [vmem:[#allocation2] sm:$0x3]  ;;  %s104_s2 = scalar_lea.vmem %s63_s1, 32  ;;  %p109_p9 = scmp.lt.s32.totalorder %s63_s1, %s63_s1 }
  0x15   :  { %74 = vrcp.f32 %v29_v1  ;;  %p105_p8 = scmp.ne.s32.totalorder %s63_s1, %s104_s2  ;;  %p110_p10 = scmp.lt.s32.totalorder %s104_s2, %s104_s2 }
  0x16   :  { %v51_v18 = vsub.s32 0, %v50_v15 }
  0x17   :  { %p111_p11 = por %p110_p10, %p109_p9 }
  0x19   :  { %p112_p12 = pnand %p111_p11, %p105_p8 }
  0x1f   :  { %v75_v2 = vpop.eup %74 }
  0x20   :  { %v31_v3 = vmul.f32 %v75_v2, %v27_v0 }
  0x22   :  { %76 = vlog2.f32 %v31_v3 }
  0x2c   :  { %v77_v4 = vpop.eup %76 }
  0x2d   :  { %v33_v6 = vmul.f32 0.6931472, %v77_v4 }
  0x2f   :  { %v34_v7 = vadd.f32 %v33_v6, %v28_v5 }
  0x31   :  { %v71_v8 = vmul.f32 -1.5, %v34_v7 }
  0x33   :  { %v38_v9 = vmul.f32 1.442695, %v71_v8 }
  0x35   :  { %78 = vpow2.f32 %v38_v9 }
  0x3f   :  { %v79_v10 = vpop.eup %78 }
  0x40   :  { %v40_v11 = vadd.f32 1.0, %v79_v10 }
  0x42   :  { %80 = vrcp.f32 %v40_v11 }
  0x4c   :  { %v81_v13 = vpop.eup %80 }
  0x4d   :  { %v43_v14 = vmul.f32 1.2, %v81_v13 }
  0x4f   :  { %v44_v16 = vadd.f32 -0.1, %v43_v14 }
  0x51   :  { %v45_v17 = vmax.f32 %v44_v16, 0.0 }
  0x53   :  { %v46_v19 = vmin.f32 %v45_v17, 1.0 }
  0x55   :  { %v52_v21 = vrot.slane %v46_v19, %v51_v18 }
  0x57   :  { %v54_v22 = vmul.f32 %v52_v21, %v47_v20 }
  0x59   :  { %55 = vst [vmem:[#allocation5] sm:$0x3] %v54_v22 }
  0x5a   :  { %115 = shalt.err (!%p112_p12)
}
  0x5b   :  { %s116_s30 = scalar_lea.hbm %s185_s3, 32 }
  0x5c   :  { %p117_p13 = scmp.ne.s32.totalorder %s185_s3, %s116_s30  ;;  %p120_p0 = scmp.lt.u32.totalorder %s116_s30, %s185_s3 }
  0x5e   :  { %p122_p1 = pnand %p120_p0, %p117_p13 }
  0x60   :  { %125 = shalt.err (!%p122_p1)
}
  0x61   :  { %65 = dma.vmem_to_hbm [thread:$0]  %s63_s1, 32, %s185_s3, [#allocation4]  }
  0x62   :  { %128 = dma.done.wait [#allocation4], 32  }
  0x63   :  { %129 = vsyncadd [#allocation4], 4294967264 }
  0x64   :  { %69 = vsyncpa [#allocation3], 1 }
  0x65   :  { %70 = vsyncpa [#allocation4], 1 }

</bundles_post_ra>
